<compile_context>
chip_gen: v7x
topology: tpu7x:2x2x1
jax: 0.10.0
libtpu: 0.0.40
codegen_flags: <defaults>
</compile_context>

<pallas_src>
import functools

import jax
import jax.numpy as jnp
from jax import lax
from jax.experimental import pallas as pl
from jax.experimental.pallas import tpu as pltpu


def _triplet_loss_kernel(e1_ref, e2_ref, e3_ref, out_ref, *,
                         margin, batch, tile_b, batch_axis):
    i = pl.program_id(0)

    @pl.when(i == 0)
    def _init():
        out_ref[...] = jnp.zeros_like(out_ref)

    reduce_axis = 1 - batch_axis
    e1 = e1_ref[...]
    d_pos = e1 - e2_ref[...]
    d_neg = e1 - e3_ref[...]
    # Per-row L2 norms; sqrt rides in the EUP slot while DMA is the bottleneck.
    pos = jnp.sqrt(jnp.sum(d_pos * d_pos, axis=reduce_axis, keepdims=True))
    neg = jnp.sqrt(jnp.sum(d_neg * d_neg, axis=reduce_axis, keepdims=True))
    loss = jnp.maximum(pos - neg + margin, 0.0)

    # Mask out zero-padded rows of the (possibly ragged) last batch tile.
    row_ids = i * tile_b + lax.broadcasted_iota(jnp.int32, loss.shape, batch_axis)
    loss = jnp.where(row_ids < batch, loss, 0.0)

    out_ref[...] += jnp.sum(loss, axis=batch_axis, keepdims=True)

    @pl.when(i == pl.num_programs(0) - 1)
    def _finalize():
        out_ref[...] *= jnp.float32(1.0 / batch)


def _round_up(x, m):
    return ((x + m - 1) // m) * m


def _pick_batch_tile(batch, feat_dim, align, override=None):
    """Batch-tile: multiple of `align`, 3 double-buffered f32 inputs <= ~24 MiB,
    capped at 512 rows (v7x-safe; still near HBM roofline on v5e/v6e)."""
    if override is not None:
        return max(align, _round_up(int(override), align))
    vmem_budget = 24 * 1024 * 1024
    per_row_bytes = 3 * 2 * feat_dim * 4        # 3 inputs x 2 pipeline buffers
    max_rows = (vmem_budget // per_row_bytes) // align * align
    max_rows = max(align, max_rows)
    return max(align, min(max_rows, 512, _round_up(batch, align)))


def triplet_loss(emb1, emb2, emb3, margin=20.0, *, tile_rows=None):
    """Pallas TPU implementation of TripletLoss.forward (mean reduction)."""
    assert emb1.shape == emb2.shape == emb3.shape and emb1.ndim == 2
    B, D = emb1.shape
    e1 = emb1.astype(jnp.float32)
    e2 = emb2.astype(jnp.float32)
    e3 = emb3.astype(jnp.float32)

    # Lane-dense layout: if D is small but B is large, put B on the 128-lane
    # axis so vregs are fully occupied; the reduction then runs over sublanes.
    lane_dense = (D < 128) and (B >= 128)
    if lane_dense:
        e1, e2, e3 = e1.T, e2.T, e3.T            # (D, B)
        batch_axis, align = 1, 128
    else:
        batch_axis, align = 0, 8

    tb = _pick_batch_tile(B, D, align, override=tile_rows)
    b_pad = _round_up(B, tb)
    if b_pad != B:
        pad = b_pad - B
        widths = ((0, 0), (0, pad)) if lane_dense else ((0, pad), (0, 0))
        e1 = jnp.pad(e1, widths)
        e2 = jnp.pad(e2, widths)
        e3 = jnp.pad(e3, widths)

    if lane_dense:
        block = (D, tb)
        index_map = lambda i: (0, i)
    else:
        block = (tb, D)
        index_map = lambda i: (i, 0)

    kernel = functools.partial(
        _triplet_loss_kernel,
        margin=float(margin), batch=int(B), tile_b=int(tb),
        batch_axis=batch_axis)

    out = pl.pallas_call(
        kernel,
        out_shape=jax.ShapeDtypeStruct((1, 1), jnp.float32),
        grid=(b_pad // tb,),
        in_specs=[
            pl.BlockSpec(block, index_map),
            pl.BlockSpec(block, index_map),
            pl.BlockSpec(block, index_map),
        ],
        # Same (0, 0) output block every step -> resident scalar accumulator.
        out_specs=pl.BlockSpec((1, 1), lambda i: (0, 0)),
        compiler_params=pltpu.CompilerParams(
            dimension_semantics=("arbitrary",),
            vmem_limit_bytes=48 * 1024 * 1024),
        cost_estimate=pl.CostEstimate(
            flops=6 * B * D + 6 * B,
            transcendentals=2 * B,
            bytes_accessed=3 * B * D * 4 + 4),
    )(e1, e2, e3)
    return out[0, 0]


def _reference(emb1, emb2, emb3, margin=20.0):
    pos = jnp.linalg.norm(emb1 - emb2, axis=1)
    neg = jnp.linalg.norm(emb1 - emb3, axis=1)
    return jnp.mean(jnp.maximum(pos - neg + margin, 0.0))


if __name__ == "__main__":
    key = jax.random.PRNGKey(0)

    def _make(b, d, k):
        k1, k2, k3 = jax.random.split(k, 3)
        return (jax.random.normal(k1, (b, d), dtype=jnp.float32),
                jax.random.normal(k2, (b, d), dtype=jnp.float32),
                jax.random.normal(k3, (b, d), dtype=jnp.float32))

    keys = jax.random.split(key, 4)

    # (B, D, margin, tile_rows override). The small overrides force multi-step
    # grids so cross-tile accumulation + ragged-tile masking are exercised.
    cases = [
        (8, 32, 20.0, None),     # original-style tiny case, single tile
        (20, 32, 20.0, 8),       # ragged batch, 3-step grid (batch-on-sublane)
        (256, 64, 5.0, None),    # small-D / large-B -> lane-dense layout
        (200, 64, 5.0, 128),     # lane-dense, ragged batch, 2-step grid
    ]

    for (b, d, m, tr), k in zip(cases, keys):
        e1, e2, e3 = _make(b, d, k)
        out = triplet_loss(e1, e2, e3, margin=m, tile_rows=tr)
        out = jax.block_until_ready(out)
        ref = _reference(e1, e2, e3, margin=m)
        assert jnp.allclose(out, ref, atol=1e-4, rtol=1e-4), (b, d, out, ref)

    print("KERNEL_OK")
</pallas_src>

<mosaic_0001>
module attributes {stable_mosaic.version = 11 : i64} {
  func.func @_triplet_loss_kernel(%arg0: i32, %arg1: memref<8x32xf32, #tpu.memory_space<vmem>>, %arg2: memref<8x32xf32, #tpu.memory_space<vmem>>, %arg3: memref<8x32xf32, #tpu.memory_space<vmem>>, %arg4: memref<1x1xf32, #tpu.memory_space<vmem>>) attributes {dimension_semantics = [#tpu.dimension_semantics<arbitrary>], iteration_bounds = array<i64: 1>, scalar_prefetch = 0 : i64, scratch_operands = 0 : i64, tpu.core_type = #tpu.core_type<tc>, window_params = [{transform_indices = @transform_0, window_bounds = array<i64: 8, 32>}, {transform_indices = @transform_1, window_bounds = array<i64: 8, 32>}, {transform_indices = @transform_2, window_bounds = array<i64: 8, 32>}, {pipeline_mode = #tpu.pipeline_mode<synchronous>, transform_indices = @transform_3, window_bounds = array<i64: 1, 1>}]} {
    %c0_i32 = arith.constant 0 : i32
    %0 = arith.cmpi eq, %arg0, %c0_i32 : i32
    %1 = arith.extui %0 : i1 to i32
    %c0_i32_0 = arith.constant 0 : i32
    %2 = arith.cmpi ne, %1, %c0_i32_0 : i32
    scf.if %2 {
      %cst_18 = arith.constant 0.000000e+00 : f32
      %37 = vector.broadcast %cst_18 : f32 to vector<1x1xf32>
      %c0_19 = arith.constant 0 : index
      %c0_20 = arith.constant 0 : index
      %38 = vector.load %arg4[%c0_19, %c0_20] : memref<1x1xf32, #tpu.memory_space<vmem>>, vector<1x1xf32>
      tpu.vector_store %arg4[%c0_19, %c0_20], %37 {strides = array<i32>} : memref<1x1xf32, #tpu.memory_space<vmem>>, vector<1x1xf32>,
    } else {
    }
    %c0 = arith.constant 0 : index
    %c0_1 = arith.constant 0 : index
    %3 = vector.load %arg1[%c0, %c0_1] : memref<8x32xf32, #tpu.memory_space<vmem>>, vector<8x32xf32>
    %c0_2 = arith.constant 0 : index
    %c0_3 = arith.constant 0 : index
    %4 = vector.load %arg2[%c0_2, %c0_3] : memref<8x32xf32, #tpu.memory_space<vmem>>, vector<8x32xf32>
    %5 = arith.subf %3, %4 : vector<8x32xf32>
    %c0_4 = arith.constant 0 : index
    %c0_5 = arith.constant 0 : index
    %6 = vector.load %arg3[%c0_4, %c0_5] : memref<8x32xf32, #tpu.memory_space<vmem>>, vector<8x32xf32>
    %7 = arith.subf %3, %6 : vector<8x32xf32>
    %8 = arith.mulf %5, %5 : vector<8x32xf32>
    %cst = arith.constant dense<0.000000e+00> : vector<8xf32>
    %9 = vector.multi_reduction <add>, %8, %cst [1] : vector<8x32xf32> to vector<8xf32>
    %10 = vector.shape_cast %9 : vector<8xf32> to vector<8x1xf32>
    %11 = math.sqrt %10 : vector<8x1xf32>
    %12 = arith.mulf %7, %7 : vector<8x32xf32>
    %cst_6 = arith.constant dense<0.000000e+00> : vector<8xf32>
    %13 = vector.multi_reduction <add>, %12, %cst_6 [1] : vector<8x32xf32> to vector<8xf32>
    %14 = vector.shape_cast %13 : vector<8xf32> to vector<8x1xf32>
    %15 = math.sqrt %14 : vector<8x1xf32>
    %16 = arith.subf %11, %15 : vector<8x1xf32>
    %cst_7 = arith.constant 2.000000e+01 : f32
    %17 = vector.broadcast %cst_7 : f32 to vector<8x1xf32>
    %18 = arith.addf %16, %17 : vector<8x1xf32>
    %cst_8 = arith.constant 0.000000e+00 : f32
    %19 = vector.broadcast %cst_8 : f32 to vector<8x1xf32>
    %20 = arith.maximumf %18, %19 : vector<8x1xf32>
    %c8_i32 = arith.constant 8 : i32
    %21 = arith.muli %arg0, %c8_i32 : i32
    %22 = tpu.iota {dimensions = array<i32: 0>} : vector<8x1xi32>
    %23 = vector.broadcast %21 : i32 to vector<8x1xi32>
    %24 = arith.addi %23, %22 : vector<8x1xi32>
    %c8_i32_9 = arith.constant 8 : i32
    %25 = vector.broadcast %c8_i32_9 : i32 to vector<8x1xi32>
    %26 = arith.cmpi slt, %24, %25 : vector<8x1xi32>
    %cst_10 = arith.constant 0.000000e+00 : f32
    %27 = vector.broadcast %cst_10 : f32 to vector<8x1xf32>
    %28 = arith.select %26, %20, %27 : vector<8x1xi1>, vector<8x1xf32>
    %c0_11 = arith.constant 0 : index
    %c0_12 = arith.constant 0 : index
    %29 = vector.load %arg4[%c0_11, %c0_12] : memref<1x1xf32, #tpu.memory_space<vmem>>, vector<1x1xf32>
    %cst_13 = arith.constant dense<0.000000e+00> : vector<1xf32>
    %30 = vector.multi_reduction <add>, %28, %cst_13 [0] : vector<8x1xf32> to vector<1xf32>
    %31 = vector.shape_cast %30 : vector<1xf32> to vector<1x1xf32>
    %32 = arith.addf %29, %31 : vector<1x1xf32>
    %c0_14 = arith.constant 0 : index
    %c0_15 = arith.constant 0 : index
    %33 = vector.load %arg4[%c0_14, %c0_15] : memref<1x1xf32, #tpu.memory_space<vmem>>, vector<1x1xf32>
    tpu.vector_store %arg4[%c0_14, %c0_15], %32 {strides = array<i32>} : memref<1x1xf32, #tpu.memory_space<vmem>>, vector<1x1xf32>,
    %c0_i32_16 = arith.constant 0 : i32
    %34 = arith.cmpi eq, %arg0, %c0_i32_16 : i32
    %35 = arith.extui %34 : i1 to i32
    %c0_i32_17 = arith.constant 0 : i32
    %36 = arith.cmpi ne, %35, %c0_i32_17 : i32
    scf.if %36 {
      %c0_18 = arith.constant 0 : index
      %c0_19 = arith.constant 0 : index
      %37 = vector.load %arg4[%c0_18, %c0_19] : memref<1x1xf32, #tpu.memory_space<vmem>>, vector<1x1xf32>
      %cst_20 = arith.constant 1.250000e-01 : f32
      %38 = vector.broadcast %cst_20 : f32 to vector<1x1xf32>
      %39 = arith.mulf %37, %38 : vector<1x1xf32>
      %c0_21 = arith.constant 0 : index
      %c0_22 = arith.constant 0 : index
      %40 = vector.load %arg4[%c0_21, %c0_22] : memref<1x1xf32, #tpu.memory_space<vmem>>, vector<1x1xf32>
      tpu.vector_store %arg4[%c0_21, %c0_22], %39 {strides = array<i32>} : memref<1x1xf32, #tpu.memory_space<vmem>>, vector<1x1xf32>,
    } else {
    }
    return
  }
  func.func @transform_0(%arg0: i32) -> (i32, i32) {
    %c0_i32 = arith.constant 0 : i32
    %c0_i32_0 = arith.constant 0 : i32
    return %arg0, %c0_i32 : i32, i32
  }
  func.func @transform_1(%arg0: i32) -> (i32, i32) {
    %c0_i32 = arith.constant 0 : i32
    %c0_i32_0 = arith.constant 0 : i32
    return %arg0, %c0_i32 : i32, i32
  }
  func.func @transform_2(%arg0: i32) -> (i32, i32) {
    %c0_i32 = arith.constant 0 : i32
    %c0_i32_0 = arith.constant 0 : i32
    return %arg0, %c0_i32 : i32, i32
  }
  func.func @transform_3(%arg0: i32) -> (i32, i32) {
    %c0_i32 = arith.constant 0 : i32
    %c0_i32_0 = arith.constant 0 : i32
    %c0_i32_1 = arith.constant 0 : i32
    return %c0_i32, %c0_i32_0 : i32, i32
  }
}

</mosaic_0001>

<bundles_post_ra>
// kernel: tpu_custom_call.1
= control target key start
LH: loop header
LB: loop body
LE: loop exit
PB: predicated region body
PF: predicated region fallthrough
CT: control target
= control target key end

     0   :  { %8 = vsyncpa [#allocation3], 0  ;;  %s305_s0 = inlined_call_operand.hbm [shape: f32[8,32], index: 0, kind: input, shape index: {}]   ;;  %s306_s1 = inlined_call_operand.hbm [shape: f32[8,32], index: 1, kind: input, shape index: {}]   ;;  %s307_s2 = inlined_call_operand.hbm [shape: f32[8,32], index: 2, kind: input, shape index: {}]   ;;  %s308_s3 = inlined_call_operand.hbm [shape: f32[1,1], index: 3, kind: output, shape index: {}]  }
   0x1   :  { %9 = vsyncpa [#allocation6], 0 }
   0x2   :  { %10 = vsyncpa [#allocation4], 0  ;;  %s229_s12 = smov [#allocation5]   ;;  %s230_s14 = smov [#allocation2]  }
   0x3   :  { %s27_s13 = sshll.u32 %s229_s12, 4  ;;  %s17_s15 = sshll.u32 %s230_s14, 4  ;;  %s28_s13 = int_to_ptr.vmem [resolvable:$true] %s27_s13  ;;  %s18_s15 = int_to_ptr.vmem [resolvable:$true] %s17_s15 }
   0x4   :  { %s135_s18 = scalar_lea.hbm %s306_s1, 128 }
   0x5   :  { %p136_p0 = scmp.ne.s32.totalorder %s306_s1, %s135_s18  ;;  %p139_p1 = scmp.lt.u32.totalorder %s135_s18, %s306_s1 }
   0x7   :  { %p141_p2 = pnand %p139_p1, %p136_p0 }
   0x9   :  { %144 = shalt.err (!%p141_p2)
}
   0xa   :  { %s145_s23 = scalar_lea.vmem %s28_s13, 128  ;;  %p150_p4 = scmp.lt.s32.totalorder %s28_s13, %s28_s13 }
   0xb   :  { %p146_p3 = scmp.ne.s32.totalorder %s28_s13, %s145_s23  ;;  %p151_p5 = scmp.lt.s32.totalorder %s145_s23, %s145_s23 }
   0xd   :  { %p152_p6 = por %p151_p5, %p150_p4 }
   0xf   :  { %p153_p7 = pnand %p152_p6, %p146_p3 }
  0x11   :  { %156 = shalt.err (!%p153_p7)
}
  0x12   :  { %30 = dma.hbm_to_vmem [thread:$0]  %s306_s1, 128, %s28_s13, [#allocation6]  }
  0x13   :  { %s157_s28 = scalar_lea.hbm %s305_s0, 128 }
  0x14   :  { %p158_p8 = scmp.ne.s32.totalorder %s305_s0, %s157_s28  ;;  %p161_p9 = scmp.lt.u32.totalorder %s157_s28, %s305_s0 }
  0x16   :  { %p163_p10 = pnand %p161_p9, %p158_p8 }
  0x18   :  { %166 = shalt.err (!%p163_p10)
}
  0x19   :  { %s167_s6 = scalar_lea.vmem %s18_s15, 128  ;;  %p172_p12 = scmp.lt.s32.totalorder %s18_s15, %s18_s15 }
  0x1a   :  { %p168_p11 = scmp.ne.s32.totalorder %s18_s15, %s167_s6  ;;  %p173_p13 = scmp.lt.s32.totalorder %s167_s6, %s167_s6 }
  0x1c   :  { %p174_p0 = por %p173_p13, %p172_p12 }
  0x1e   :  { %p175_p1 = pnand %p174_p0, %p168_p11 }
  0x20   :  { %178 = shalt.err (!%p175_p1)
}
  0x21   :  { %20 = dma.hbm_to_vmem [thread:$0]  %s305_s0, 128, %s18_s15, [#allocation3]  }
  0x22   :  { %s231_s8 = smov [#allocation7]   ;;  %s179_s12 = scalar_lea.hbm %s307_s2, 128 }
  0x23   :  { %s37_s9 = sshll.u32 %s231_s8, 4  ;;  %p180_p2 = scmp.ne.s32.totalorder %s307_s2, %s179_s12  ;;  %s38_s9 = int_to_ptr.vmem [resolvable:$true] %s37_s9 }
  0x24   :  { %p183_p3 = scmp.lt.u32.totalorder %s179_s12, %s307_s2 }
  0x26   :  { %p185_p4 = pnand %p183_p3, %p180_p2 }
  0x28   :  { %188 = shalt.err (!%p185_p4)
}
  0x29   :  { %s189_s18 = scalar_lea.vmem %s38_s9, 128  ;;  %p194_p6 = scmp.lt.s32.totalorder %s38_s9, %s38_s9 }
  0x2a   :  { %p190_p5 = scmp.ne.s32.totalorder %s38_s9, %s189_s18  ;;  %p195_p7 = scmp.lt.s32.totalorder %s189_s18, %s189_s18 }
  0x2c   :  { %p196_p8 = por %p195_p7, %p194_p6 }
  0x2e   :  { %p197_p9 = pnand %p196_p8, %p190_p5 }
  0x30   :  { %200 = shalt.err (!%p197_p9)
}
  0x31   :  { %40 = dma.hbm_to_vmem [thread:$0]  %s307_s2, 128, %s38_s9, [#allocation6]  }
  0x32   :  { %223 = dma.done.wait [#allocation3], 128  }
  0x33   :  { %224 = vsyncadd [#allocation3], 4294967168 }
  0x34   :  { %225 = dma.done.wait [#allocation6], 256  }
  0x35   :  { %226 = vsyncadd [#allocation6], 4294967040  ;;  %v56_v0 = vld [vmem:[#allocation2] sm:$0xff]  ;;  %v57_v1 = vld [vmem:[#allocation5] sm:$0xff]  ;;  %vm62_vm0 = vcmask 261120   ;;  %vm54_vm1 = vcmask 0  }
  0x36   :  { %v59_v2 = vld [vmem:[#allocation7] sm:$0xff]  ;;  %v58_v3 = vsub.f32 %v56_v0, %v57_v1  ;;  %v232_v9 = vmov 0.0   ;;  %s233_s2 = smov [#allocation8]  }
  0x37   :  { %v60_v4 = vsub.f32 %v56_v0, %v59_v2  ;;  %55 = vst.msk [vmem:[#allocation8] sm:$0x1] %vm54_vm1, %v232_v9  ;;  %s116_s19 = sshll.u32 %s233_s2, 4  ;;  %s117_s19 = int_to_ptr.vmem [resolvable:$true] %s116_s19 }
  0x38   :  { %v61_v5 = vmul.f32 %v58_v3, %v58_v3  ;;  %s201_s20 = scalar_lea.vmem %s117_s19, 16  ;;  %s205_s21 = scalar_lea.vmem %s117_s19, 32 }
  0x39   :  { %v73_v6 = vmul.f32 %v60_v4, %v60_v4  ;;  %p202_p10 = scmp.ne.s32.totalorder %s117_s19, %s201_s20  ;;  %p206_p11 = scmp.lt.s32.totalorder %s117_s19, %s117_s19 }
  0x3a   :  { %v63_v7 = vsel %vm62_vm0, %v61_v5, 0.0  ;;  %p207_p12 = scmp.lt.s32.totalorder %s205_s21, %s201_s20 }
  0x3b   :  { %64 = vadd.xlane.f32.xlu0 %v63_v7  ;;  %v74_v8 = vsel %vm62_vm0, %v73_v6, 0.0 }
  0x3c   :  { %p208_p13 = por %p207_p12, %p206_p11 }
  0x3e   :  { %v94_v30 = vld [vmem:[#allocation8] sm:$0x1]  ;;  %p209_p0 = pnand %p208_p13, %p202_p10 }
  0x3f   :  { %75 = vadd.xlane.f32.xlu0 %v74_v8 }
  0xc8   :  { %v65_v10 = vpop.xlane.xlu0 %64 }
  0xc9   :  { %131 = vrsqrt.f32 %v65_v10  ;;  %vm68_vm2 = vcmp.eq.f32.partialorder %v65_v10, inf  ;;  %v71_v17 = vand.u32 2147483648, %v65_v10  ;;  %vm70_vm4 = vcmp.eq.f32.partialorder %v65_v10, 0.0 }
  0xcc   :  { %v76_v11 = vpop.xlane.xlu0 %75 }
  0xcd   :  { %133 = vrsqrt.f32 %v76_v11  ;;  %vm79_vm3 = vcmp.eq.f32.partialorder %v76_v11, inf  ;;  %v82_v18 = vand.u32 2147483648, %v76_v11  ;;  %vm81_vm5 = vcmp.eq.f32.partialorder %v76_v11, 0.0 }
  0xd3   :  { %v132_v12 = vpop.eup %131 }
  0xd4   :  { %v67_v13 = vmul.f32 %v132_v12, %v65_v10 }
  0xd6   :  { %v69_v15 = vsel %vm68_vm2, %v65_v10, %v67_v13 }
  0xd7   :  { %v134_v14 = vpop.eup %133  ;;  %v72_v20 = vsel %vm70_vm4, %v71_v17, %v69_v15 }
  0xd8   :  { %v78_v16 = vmul.f32 %v134_v14, %v76_v11 }
  0xda   :  { %v80_v19 = vsel %vm79_vm3, %v76_v11, %v78_v16 }
  0xdb   :  { %v83_v21 = vsel %vm81_vm5, %v82_v18, %v80_v19 }
  0xdc   :  { %v84_v22 = vsub.f32 %v72_v20, %v83_v21 }
  0xde   :  { %v85_v23 = vadd.f32 20.0, %v84_v22 }
  0xe0   :  { %v86_v24 = vmax.f32 %v85_v23, 0.0 }
  0xe2   :  { %v95_v25 = vrot.slane %v86_v24, 4 }
  0xe4   :  { %v96_v26 = vadd.f32 %v95_v25, %v86_v24 }
  0xe6   :  { %v97_v27 = vrot.slane %v96_v26, 2 }
  0xe8   :  { %v98_v28 = vadd.f32 %v97_v27, %v96_v26 }
  0xea   :  { %v99_v29 = vrot.slane %v98_v28, 1 }
  0xec   :  { %v100_v31 = vadd.f32 %v99_v29, %v98_v28 }
  0xee   :  { %v101_v32 = vadd.f32 %v100_v31, %v94_v30 }
  0xf0   :  { %103 = vst.msk [vmem:[#allocation8] sm:$0x1] %vm54_vm1, %v101_v32 }
  0xf7   :  { %v107_v33 = vld [vmem:[#allocation8] sm:$0x1] }
  0xf8   :  { %v108_v34 = vmul.f32 0.125, %v107_v33 }
  0xfa   :  { %109 = vst.msk [vmem:[#allocation8] sm:$0x1] %vm54_vm1, %v108_v34 }
  0xfb   :  { %212 = shalt.err (!%p209_p0)
}
  0xfc   :  { %s213_s24 = scalar_lea.hbm %s308_s3, 16 }
  0xfd   :  { %p214_p1 = scmp.ne.s32.totalorder %s308_s3, %s213_s24  ;;  %p217_p2 = scmp.lt.u32.totalorder %s213_s24, %s308_s3 }
  0xff   :  { %p219_p3 = pnand %p217_p2, %p214_p1 }
 0x101   :  { %222 = shalt.err (!%p219_p3)
}
 0x102   :  { %119 = dma.vmem_to_hbm [thread:$0]  %s117_s19, 16, %s308_s3, [#allocation4]  }
 0x103   :  { %227 = dma.done.wait [#allocation4], 16  }
 0x104   :  { %228 = vsyncadd [#allocation4], 4294967280 }
 0x105   :  { %123 = vsyncpa [#allocation3], 1 }
 0x106   :  { %124 = vsyncpa [#allocation6], 1 }
 0x107   :  { %125 = vsyncpa [#allocation4], 1 }

</bundles_post_ra>
